<compile_context>
chip_gen: v5e
topology: v5e:2x2
jax: 0.10.0
libtpu: 0.0.40
codegen_flags: <defaults>
</compile_context>

<pallas_src>
import functools

import jax
import jax.numpy as jnp
from jax import lax
from jax.experimental import pallas as pl
from jax.experimental.pallas import tpu as pltpu


def _round_up(x, m):
    return ((x + m - 1) // m) * m


def _softplus(x):
    # single-branch stable softplus: max(x, 0) + log1p(exp(-|x|))
    return jnp.maximum(x, 0.0) + jnp.log1p(jnp.exp(-jnp.abs(x)))


def standard_nn_kernel(x_ref, w1_ref, b1_ref, w2_ref, b2_ref, out_ref):
    # fc1 + ReLU: (TB, K) bf16 @ (K, Hp) bf16 on the MXU with f32 accumulation;
    # Hp is a multiple of 128 so the bias add / ReLU use every lane.
    h = jnp.dot(x_ref[...], w1_ref[...], preferred_element_type=jnp.float32)
    h = jnp.maximum(h + b1_ref[...], 0.0)                        # (TB, Hp) f32

    # fc2: plain (TB, Hp) @ (Hp, 2) -> (TB, 2). Natural operand orientation, so no
    # XLU transpose of the big h tile; the tiny 2-lane output store is negligible.
    y = jnp.dot(h, w2_ref[...], preferred_element_type=jnp.float32) + b2_ref[...]

    # Column 0 = mean (identity), column 1 = variance = softplus(log_var) + 1e-6.
    # Column-select via an iota mask (no lane slice / concat relayouts); the extra
    # softplus on column 0 is a couple of EUP ops on a tiny (TB, 2) tile.
    col = lax.broadcasted_iota(jnp.int32, y.shape, 1)
    out = jnp.where(col == 1, _softplus(y) + 1e-6, y)
    out_ref[...] = out.astype(out_ref.dtype)


def prepare_params(w1, b1, w2, b2):
    """Pad / cast the model weights once (hoisted out of the per-call path).

    w1: (input_size, hidden) , b1: (hidden,), w2: (hidden, 2), b2: (2,)
    (weights stored transposed vs. torch Linear.weight)
    """
    K, H = w1.shape
    assert w2.shape == (H, 2) and b1.shape == (H,) and b2.shape == (2,)
    Hp = max(128, _round_up(H, 128))  # lane-pad hidden dim; zero columns are exact no-ops
    w1p = jnp.zeros((K, Hp), jnp.bfloat16).at[:, :H].set(w1.astype(jnp.bfloat16))
    b1p = jnp.zeros((1, Hp), jnp.float32).at[:, :H].set(b1.reshape(1, H).astype(jnp.float32))
    w2p = jnp.zeros((Hp, 2), jnp.float32).at[:H, :].set(w2.astype(jnp.float32))
    b2p = b2.reshape(1, 2).astype(jnp.float32)
    return w1p, b1p, w2p, b2p


@functools.partial(jax.jit, static_argnames=("block_b",))
def standard_nn_forward(x, w1p, b1p, w2p, b2p, block_b=8192):
    """Forward pass of StandardNN (output_size == 2 branch).

    x   : (B, input_size) f32 (cast to bf16 for the MXU stream)
    w1p : (input_size, Hp) bf16, b1p: (1, Hp) f32, w2p: (Hp, 2) f32, b2p: (1, 2) f32
          (from prepare_params)
    Returns (mean, variance), each of shape (B,) f32.
    """
    B, K = x.shape
    Hp = w1p.shape[1]

    # Batch tile: multiple of 128, capped at block_b, and chosen so that large B gives
    # >= 2 grid steps (the "parallel" batch axis then shards across v7x's 2 TCs).
    TB = min(block_b, max(128, _round_up(-(-B // 2), 128)))
    grid_b = pl.cdiv(B, TB)
    B_out = grid_b * TB  # output padded to whole blocks; sliced back to B below

    x_bf16 = x.astype(jnp.bfloat16)  # single dtype cast; NO padded copy of x

    flops = 2 * B_out * K * Hp + 2 * B_out * Hp * 2
    transcendentals = 4 * B_out  # exp + log1p on both columns of the (TB, 2) tile
    bytes_accessed = (B * K * 2 + K * Hp * 2 + Hp * 4 + Hp * 2 * 4 + 2 * 4
                      + B_out * 2 * 4)

    # double-buffered x stream + resident weights + double-buffered (TB, 2) output + slack
    vmem_need = 2 * TB * K * 2 + K * Hp * 2 + Hp * 4 + Hp * 8 + 2 * TB * 8 + (1 << 20)
    vmem_limit = int(min(64 << 20, max(16 << 20, 2 * vmem_need)))

    out = pl.pallas_call(
        standard_nn_kernel,
        out_shape=jax.ShapeDtypeStruct((B_out, 2), jnp.float32),
        grid_spec=pltpu.PrefetchScalarGridSpec(
            num_scalar_prefetch=0,
            grid=(grid_b,),
            in_specs=[
                pl.BlockSpec((TB, K), lambda i: (i, 0)),   # x: streamed; ragged last block masked
                pl.BlockSpec((K, Hp), lambda i: (0, 0)),   # w1: VMEM-resident (bf16)
                pl.BlockSpec((1, Hp), lambda i: (0, 0)),   # b1: VMEM-resident
                pl.BlockSpec((Hp, 2), lambda i: (0, 0)),   # w2: VMEM-resident
                pl.BlockSpec((1, 2), lambda i: (0, 0)),    # b2: VMEM-resident
            ],
            out_specs=pl.BlockSpec((TB, 2), lambda i: (i, 0)),
        ),
        compiler_params=pltpu.CompilerParams(
            dimension_semantics=("parallel",),   # megacore-shardable batch axis on v7x
            vmem_limit_bytes=vmem_limit,
        ),
        cost_estimate=pl.CostEstimate(
            flops=flops, transcendentals=transcendentals, bytes_accessed=bytes_accessed),
    )(x_bf16, w1p, b1p, w2p, b2p)

    # Rows are independent, so garbage in the masked boundary rows never touches [:B].
    return out[:B, 0], out[:B, 1]


def init_params(key, input_size, hidden_size, output_size=2):
    """Kaiming-normal weights (fan_in, gain=sqrt(2)), zero biases; weights stored (in, out)."""
    k1, k2 = jax.random.split(key)
    std1 = (2.0 / input_size) ** 0.5
    std2 = (2.0 / hidden_size) ** 0.5
    w1 = jax.random.normal(k1, (input_size, hidden_size), dtype=jnp.float32) * std1
    b1 = jnp.zeros((hidden_size,), dtype=jnp.float32)
    w2 = jax.random.normal(k2, (hidden_size, output_size), dtype=jnp.float32) * std2
    b2 = jnp.zeros((output_size,), dtype=jnp.float32)
    return w1, b1, w2, b2


# TODO(synk): the PyTorch module's output_size != 2 branch (plain pass-through of fc2
# output) is not implemented here; this kernel covers the (mean, variance) branch.

if __name__ == "__main__":
    input_size, hidden_size, output_size = 32, 32, 2
    batch = 8

    key = jax.random.PRNGKey(0)
    kx, kp = jax.random.split(key)
    x = jax.random.normal(kx, (batch, input_size), dtype=jnp.float32)
    w1, b1, w2, b2 = init_params(kp, input_size, hidden_size, output_size)
    params = prepare_params(w1, b1, w2, b2)

    mean, variance = standard_nn_forward(x, *params)
    jax.block_until_ready((mean, variance))

    # Pure-JAX f32 reference; kernel streams x/w1 in bf16 -> relaxed tolerances.
    h_ref = jnp.maximum(x @ w1 + b1.reshape(1, -1), 0.0)
    y_ref = h_ref @ w2 + b2.reshape(1, -1)
    mean_ref = y_ref[:, 0]
    var_ref = jax.nn.softplus(y_ref[:, 1]) + 1e-6
    assert mean.shape == (batch,) and variance.shape == (batch,)
    assert jnp.allclose(mean, mean_ref, atol=3e-2, rtol=3e-2), "mean mismatch"
    assert jnp.allclose(variance, var_ref, atol=3e-2, rtol=3e-2), "variance mismatch"

    print("KERNEL_OK")
</pallas_src>

<mosaic_0001>
module attributes {stable_mosaic.version = 11 : i64} {
  func.func @standard_nn_kernel(%arg0: i32, %arg1: memref<128x32xbf16, #tpu.memory_space<vmem>>, %arg2: memref<32x128xbf16, #tpu.memory_space<vmem>>, %arg3: memref<1x128xf32, #tpu.memory_space<vmem>>, %arg4: memref<128x2xf32, #tpu.memory_space<vmem>>, %arg5: memref<1x2xf32, #tpu.memory_space<vmem>>, %arg6: memref<128x2xf32, #tpu.memory_space<vmem>>) attributes {dimension_semantics = [#tpu.dimension_semantics<parallel>], iteration_bounds = array<i64: 1>, scalar_prefetch = 0 : i64, scratch_operands = 0 : i64, tpu.core_type = #tpu.core_type<tc>, window_params = [{transform_indices = @transform_0, window_bounds = array<i64: 128, 32>}, {pipeline_mode = #tpu.pipeline_mode<synchronous>, transform_indices = @transform_1, window_bounds = array<i64: 32, 128>}, {pipeline_mode = #tpu.pipeline_mode<synchronous>, transform_indices = @transform_2, window_bounds = array<i64: 1, 128>}, {pipeline_mode = #tpu.pipeline_mode<synchronous>, transform_indices = @transform_3, window_bounds = array<i64: 128, 2>}, {pipeline_mode = #tpu.pipeline_mode<synchronous>, transform_indices = @transform_4, window_bounds = array<i64: 1, 2>}, {transform_indices = @transform_5, window_bounds = array<i64: 128, 2>}]} {
    %c0 = arith.constant 0 : index
    %c0_0 = arith.constant 0 : index
    %0 = vector.load %arg1[%c0, %c0_0] : memref<128x32xbf16, #tpu.memory_space<vmem>>, vector<128x32xbf16>
    %c0_1 = arith.constant 0 : index
    %c0_2 = arith.constant 0 : index
    %1 = vector.load %arg2[%c0_1, %c0_2] : memref<32x128xbf16, #tpu.memory_space<vmem>>, vector<32x128xbf16>
    %cst = arith.constant dense<0.000000e+00> : vector<128x128xf32>
    %2 = tpu.matmul %0, %1, %cst {dimension_numbers = #tpu.dot_dimension_numbers<[1], [0], [0], [1], [0, 0, 1, 1], [], []>} : vector<128x32xbf16>, vector<32x128xbf16>, vector<128x128xf32> -> vector<128x128xf32>
    %c0_3 = arith.constant 0 : index
    %c0_4 = arith.constant 0 : index
    %3 = vector.load %arg3[%c0_3, %c0_4] : memref<1x128xf32, #tpu.memory_space<vmem>>, vector<1x128xf32>
    %4 = vector.broadcast %3 : vector<1x128xf32> to vector<128x128xf32>
    %5 = arith.addf %2, %4 : vector<128x128xf32>
    %cst_5 = arith.constant 0.000000e+00 : f32
    %6 = vector.broadcast %cst_5 : f32 to vector<128x128xf32>
    %7 = arith.maximumf %5, %6 : vector<128x128xf32>
    %c0_6 = arith.constant 0 : index
    %c0_7 = arith.constant 0 : index
    %8 = vector.load %arg4[%c0_6, %c0_7] : memref<128x2xf32, #tpu.memory_space<vmem>>, vector<128x2xf32>
    %cst_8 = arith.constant dense<0.000000e+00> : vector<128x2xf32>
    %9 = tpu.matmul %7, %8, %cst_8 {dimension_numbers = #tpu.dot_dimension_numbers<[1], [0], [0], [1], [0, 0, 1, 1], [], []>} : vector<128x128xf32>, vector<128x2xf32>, vector<128x2xf32> -> vector<128x2xf32>
    %c0_9 = arith.constant 0 : index
    %c0_10 = arith.constant 0 : index
    %10 = vector.load %arg5[%c0_9, %c0_10] : memref<1x2xf32, #tpu.memory_space<vmem>>, vector<1x2xf32>
    %11 = vector.broadcast %10 : vector<1x2xf32> to vector<128x2xf32>
    %12 = arith.addf %9, %11 : vector<128x2xf32>
    %13 = tpu.iota {dimensions = array<i32: 1>} : vector<128x2xi32>
    %c1_i32 = arith.constant 1 : i32
    %14 = vector.broadcast %c1_i32 : i32 to vector<128x2xi32>
    %15 = arith.cmpi eq, %13, %14 : vector<128x2xi32>
    %cst_11 = arith.constant 0.000000e+00 : f32
    %16 = vector.broadcast %cst_11 : f32 to vector<128x2xf32>
    %17 = arith.maximumf %12, %16 : vector<128x2xf32>
    %18 = math.absf %12 : vector<128x2xf32>
    %cst_12 = arith.constant 0.000000e+00 : f32
    %19 = vector.broadcast %cst_12 : f32 to vector<128x2xf32>
    %20 = arith.subf %19, %18 : vector<128x2xf32>
    %21 = math.exp %20 : vector<128x2xf32>
    %22 = math.log1p %21 : vector<128x2xf32>
    %23 = arith.addf %17, %22 : vector<128x2xf32>
    %cst_13 = arith.constant 9.99999997E-7 : f32
    %24 = vector.broadcast %cst_13 : f32 to vector<128x2xf32>
    %25 = arith.addf %23, %24 : vector<128x2xf32>
    %26 = arith.select %15, %25, %12 : vector<128x2xi1>, vector<128x2xf32>
    %c0_14 = arith.constant 0 : index
    %c0_15 = arith.constant 0 : index
    %27 = vector.load %arg6[%c0_14, %c0_15] : memref<128x2xf32, #tpu.memory_space<vmem>>, vector<128x2xf32>
    tpu.vector_store %arg6[%c0_14, %c0_15], %26 {strides = array<i32>} : memref<128x2xf32, #tpu.memory_space<vmem>>, vector<128x2xf32>,
    return
  }
  func.func @transform_0(%arg0: i32) -> (i32, i32) {
    %c0_i32 = arith.constant 0 : i32
    %c0_i32_0 = arith.constant 0 : i32
    return %arg0, %c0_i32 : i32, i32
  }
  func.func @transform_1(%arg0: i32) -> (i32, i32) {
    %c0_i32 = arith.constant 0 : i32
    %c0_i32_0 = arith.constant 0 : i32
    %c0_i32_1 = arith.constant 0 : i32
    return %c0_i32, %c0_i32_0 : i32, i32
  }
  func.func @transform_2(%arg0: i32) -> (i32, i32) {
    %c0_i32 = arith.constant 0 : i32
    %c0_i32_0 = arith.constant 0 : i32
    %c0_i32_1 = arith.constant 0 : i32
    return %c0_i32, %c0_i32_0 : i32, i32
  }
  func.func @transform_3(%arg0: i32) -> (i32, i32) {
    %c0_i32 = arith.constant 0 : i32
    %c0_i32_0 = arith.constant 0 : i32
    %c0_i32_1 = arith.constant 0 : i32
    return %c0_i32, %c0_i32_0 : i32, i32
  }
  func.func @transform_4(%arg0: i32) -> (i32, i32) {
    %c0_i32 = arith.constant 0 : i32
    %c0_i32_0 = arith.constant 0 : i32
    %c0_i32_1 = arith.constant 0 : i32
    return %c0_i32, %c0_i32_0 : i32, i32
  }
  func.func @transform_5(%arg0: i32) -> (i32, i32) {
    %c0_i32 = arith.constant 0 : i32
    %c0_i32_0 = arith.constant 0 : i32
    return %arg0, %c0_i32 : i32, i32
  }
}

</mosaic_0001>

<bundles_post_ra>
// kernel: standard_nn_forward.1
= control target key start
LH: loop header
LB: loop body
LE: loop exit
PB: predicated region body
PF: predicated region fallthrough
CT: control target
= control target key end

     0   :  { %vm97_vm0 = vcmask 261120   ;;  %vm547_vm3 = vcmask 15360   ;;  %s1047_s1 = inlined_call_operand.vmem [shape: bf16[32,128], index: 1, kind: input, shape index: {}]   ;;  %s1048_s2 = inlined_call_operand.vmem [shape: f32[1,128], index: 2, kind: input, shape index: {}]   ;;  %s1049_s0 = inlined_call_operand.vmem [shape: bf16[8,32], index: 0, kind: input, shape index: {}]   ;;  %s1050_s3 = inlined_call_operand.vmem [shape: f32[128,2], index: 3, kind: input, shape index: {}]   ;;  %s1051_s4 = inlined_call_operand.vmem [shape: f32[1,2], index: 4, kind: input, shape index: {}]   ;;  %s1052_s5 = inlined_call_operand.vmem [shape: f32[128,2], index: 5, kind: output, shape index: {}]  }
   0x1   :  { %v625_v0 = vld [vmem:[%s1047_s1 + $0x8] sm:$0xff]  ;;  %v624_v1 = vld [vmem:[%s1047_s1] sm:$0xff]  ;;  %v622_v5 = vld [vmem:[%s1049_s0 + $0x30] sm:$0xff] }
   0x2   :  { %128 = vmatpush.bf16.msra.mxu0 %v625_v0  ;;  %626 = vmatpush.bf16.msra.mxu3 %v625_v0  ;;  %v616_v2 = vld [vmem:[%s1049_s0] sm:$0xff]  ;;  %v621_v3 = vld [vmem:[%s1049_s0 + $0x28] sm:$0xff]  ;;  %v618_v6 = vld [vmem:[%s1049_s0 + $0x10] sm:$0xff] }
   0x3   :  { %v617_v4 = vld [vmem:[%s1049_s0 + $0x8] sm:$0xff]  ;;  %v623_v7 = vld [vmem:[%s1049_s0 + $0x38] sm:$0xff]  ;;  %v201_v9 = vld [vmem:[%s1050_s3 + $0x70] sm:$0xff] }
   0x4   :  { %v202_v8 = vld [vmem:[%s1050_s3 + $0x78] sm:$0xff]  ;;  %v200_v10 = vld [vmem:[%s1050_s3 + $0x68] sm:$0xff]  ;;  %v199_v11 = vld [vmem:[%s1050_s3 + $0x60] sm:$0xff] }
   0x5   :  { %207 = vmatpush.msra.mxu1 %v202_v8  ;;  %628 = vmatpush.msra.mxu2 %v202_v8  ;;  %v198_v12 = vld [vmem:[%s1050_s3 + $0x58] sm:$0xff]  ;;  %v197_v13 = vld [vmem:[%s1050_s3 + $0x50] sm:$0xff]  ;;  %v196_v14 = vld [vmem:[%s1050_s3 + $0x48] sm:$0xff] }
   0x6   :  { %129 = vmatpush.bf16.msra.mxu0 %v624_v1  ;;  %627 = vmatpush.bf16.msra.mxu3 %v624_v1  ;;  %v619_v15 = vld [vmem:[%s1049_s0 + $0x18] sm:$0xff]  ;;  %v195_v16 = vld [vmem:[%s1050_s3 + $0x40] sm:$0xff]  ;;  %v193_v18 = vld [vmem:[%s1050_s3 + $0x30] sm:$0xff] }
   0x7   :  { %208 = vmatpush.msra.mxu1 %v201_v9  ;;  %630 = vmatpush.msra.mxu2 %v201_v9  ;;  %v194_v17 = vld [vmem:[%s1050_s3 + $0x38] sm:$0xff]  ;;  %v192_v19 = vld [vmem:[%s1050_s3 + $0x28] sm:$0xff]  ;;  %v191_v20 = vld [vmem:[%s1050_s3 + $0x20] sm:$0xff] }
   0x8   :  { %v190_v21 = vld [vmem:[%s1050_s3 + $0x18] sm:$0xff]  ;;  %v620_v22 = vld [vmem:[%s1049_s0 + $0x20] sm:$0xff]  ;;  %v189_v23 = vld [vmem:[%s1050_s3 + $0x10] sm:$0xff] }
   0x9   :  { %608 = vmatmul.msk.bf16.vlgmr.msra.gmra.mxu0 %vm97_vm0, %v616_v2  ;;  %613 = vmatmul.msk.bf16.vlgmr.msra.gmra.mxu3 %vm97_vm0, %v621_v3  ;;  %v188_v24 = vld [vmem:[%s1050_s3 + $0x8] sm:$0xff]  ;;  %v187_v25 = vld [vmem:[%s1050_s3] sm:$0xff] }
   0xa   :  { %629 = vmatpush.msrb.mxu3 %v202_v8  ;;  %209 = vmatpush.msra.mxu1 %v200_v10  ;;  %v660_v26 = vld [vmem:[%s1048_s2] ss:$0 sm:$0xff] }
   0xb   :  { %632 = vmatpush.msra.mxu2 %v200_v10 }
   0xc   :  { %631 = vmatpush.msrb.mxu3 %v201_v9  ;;  %210 = vmatpush.msra.mxu1 %v199_v11 }
   0xd   :  { %634 = vmatpush.msra.mxu2 %v199_v11 }
   0xe   :  { %633 = vmatpush.msrb.mxu3 %v200_v10  ;;  %211 = vmatpush.msra.mxu1 %v198_v12 }
   0xf   :  { %636 = vmatpush.msra.mxu2 %v198_v12 }
  0x10   :  { %635 = vmatpush.msrb.mxu3 %v199_v11  ;;  %212 = vmatpush.msra.mxu1 %v197_v13  ;;  %v848_v11 = vld [vmem:[%s1051_s4] ss:$0 sm:$0xff] }
  0x11   :  { %638 = vmatpush.msra.mxu2 %v197_v13 }
  0x12   :  { %637 = vmatpush.msrb.mxu3 %v198_v12  ;;  %213 = vmatpush.msra.mxu1 %v196_v14 }
  0x13   :  { %640 = vmatpush.msra.mxu2 %v196_v14 }
  0x14   :  { %639 = vmatpush.msrb.mxu3 %v197_v13  ;;  %214 = vmatpush.msra.mxu1 %v195_v16 }
  0x15   :  { %642 = vmatpush.msra.mxu2 %v195_v16 }
  0x16   :  { %641 = vmatpush.msrb.mxu3 %v196_v14  ;;  %215 = vmatpush.msra.mxu1 %v194_v17 }
  0x17   :  { %644 = vmatpush.msra.mxu2 %v194_v17 }
  0x18   :  { %643 = vmatpush.msrb.mxu3 %v195_v16  ;;  %216 = vmatpush.msra.mxu1 %v193_v18 }
  0x19   :  { %609 = vmatmul.msk.bf16.gmra.mxu0 %vm97_vm0, %v617_v4  ;;  %614 = vmatmul.msk.bf16.gmra.mxu3 %vm97_vm0, %v622_v5 }
  0x1a   :  { %645 = vmatpush.msrb.mxu3 %v194_v17  ;;  %646 = vmatpush.msra.mxu2 %v193_v18 }
  0x1b   :  { %217 = vmatpush.msra.mxu1 %v192_v19 }
  0x1c   :  { %647 = vmatpush.msrb.mxu3 %v193_v18  ;;  %648 = vmatpush.msra.mxu2 %v192_v19 }
  0x1d   :  { %218 = vmatpush.msra.mxu1 %v191_v20 }
  0x1e   :  { %649 = vmatpush.msrb.mxu3 %v192_v19  ;;  %650 = vmatpush.msra.mxu2 %v191_v20 }
  0x1f   :  { %219 = vmatpush.msra.mxu1 %v190_v21 }
  0x20   :  { %651 = vmatpush.msrb.mxu3 %v191_v20  ;;  %652 = vmatpush.msra.mxu2 %v190_v21 }
  0x21   :  { %220 = vmatpush.msra.mxu1 %v189_v23 }
  0x22   :  { %653 = vmatpush.msrb.mxu3 %v190_v21  ;;  %654 = vmatpush.msra.mxu2 %v189_v23 }
  0x23   :  { %221 = vmatpush.msra.mxu1 %v188_v24 }
  0x24   :  { %655 = vmatpush.msrb.mxu3 %v189_v23  ;;  %656 = vmatpush.msra.mxu2 %v188_v24 }
  0x25   :  { %222 = vmatpush.msra.mxu1 %v187_v25 }
  0x26   :  { %657 = vmatpush.msrb.mxu3 %v188_v24  ;;  %658 = vmatpush.msra.mxu2 %v187_v25 }
  0x28   :  { %659 = vmatpush.msrb.mxu3 %v187_v25 }
  0x29   :  { %610 = vmatmul.msk.bf16.gmra.mxu0 %vm97_vm0, %v618_v6  ;;  %615 = vmatmul.msk.bf16.gmra.mxu3 %vm97_vm0, %v623_v7 }
  0x39   :  { %611 = vmatmul.msk.bf16.gmra.mxu0 %vm97_vm0, %v619_v15 }
  0x49   :  { %612 = vmatmul.msk.bf16.gmra.mxu0 %vm97_vm0, %v620_v22 }
  0x86   :  { %v131_v27 = vpop.f32.mrf.mxu0 }
  0x87   :  { %v132_v28 = vadd.f32 %v660_v26, %v131_v27 }
  0x89   :  { %v171_v29 = vmax.f32 %v132_v28, 0.0  ;;  %v272_v28 = vlaneseq }
  0x8b   :  { %223 = vmatmul.f32.vlgmr.msra.gmra.mxu1 %v171_v29 }
  0x8c   :  { %v156_v30 = vpop.f32.mrf.mxu3 }
  0x8d   :  { %v157_v3 = vadd.f32 %v660_v26, %v156_v30 }
  0x8e   :  { %v133_v31 = vpop.f32.mrf.mxu0 }
  0x8f   :  { %v134_v32 = vadd.f32 %v660_v26, %v133_v31  ;;  %v181_v4 = vmax.f32 %v157_v3, 0.0 }
  0x91   :  { %v172_v33 = vmax.f32 %v134_v32, 0.0 }
  0x93   :  { %226 = vmatmul.f32.gmra.mxu1 %v172_v33 }
  0x94   :  { %v158_v34 = vpop.f32.mrf.mxu3 }
  0x95   :  { %v159_v5 = vadd.f32 %v660_v26, %v158_v34 }
  0x96   :  { %v136_v35 = vpop.f32.mrf.mxu0 }
  0x97   :  { %v137_v36 = vadd.f32 %v660_v26, %v136_v35  ;;  %v182_v6 = vmax.f32 %v159_v5, 0.0  ;;  %v859_v35 = vand.u32 127, %v272_v28 }
  0x99   :  { %v173_v37 = vmax.f32 %v137_v36, 0.0  ;;  %vm274_vm2 = vcmp.eq.s32.totalorder %v859_v35, 1 }
  0x9b   :  { %229 = vmatmul.f32.gmra.mxu1 %v173_v37 }
  0x9c   :  { %v161_v38 = vpop.f32.mrf.mxu3 }
  0x9d   :  { %v162_v7 = vadd.f32 %v660_v26, %v161_v38 }
  0x9e   :  { %v138_v39 = vpop.f32.mrf.mxu0 }
  0x9f   :  { %v139_v40 = vadd.f32 %v660_v26, %v138_v39  ;;  %v183_v8 = vmax.f32 %v162_v7, 0.0 }
  0xa1   :  { %v174_v41 = vmax.f32 %v139_v40, 0.0 }
  0xa3   :  { %232 = vmatmul.f32.gmra.mxu1 %v174_v41 }
  0xa4   :  { %v163_v42 = vpop.f32.mrf.mxu3 }
  0xa5   :  { %v164_v9 = vadd.f32 %v660_v26, %v163_v42 }
  0xa6   :  { %v141_v43 = vpop.f32.mrf.mxu0 }
  0xa7   :  { %v142_v44 = vadd.f32 %v660_v26, %v141_v43  ;;  %v184_v10 = vmax.f32 %v164_v9, 0.0 }
  0xa9   :  { %v175_v45 = vmax.f32 %v142_v44, 0.0 }
  0xab   :  { %235 = vmatmul.f32.gmra.mxu1 %v175_v45 }
  0xac   :  { %v166_v46 = vpop.f32.mrf.mxu3 }
  0xad   :  { %v167_v47 = vadd.f32 %v660_v26, %v166_v46 }
  0xae   :  { %v143_v48 = vpop.f32.mrf.mxu0 }
  0xaf   :  { %v144_v49 = vadd.f32 %v660_v26, %v143_v48  ;;  %v185_v50 = vmax.f32 %v167_v47, 0.0 }
  0xb1   :  { %v176_v51 = vmax.f32 %v144_v49, 0.0  ;;  %265 = vmatmul.f32.vlgmr.msrb.gmra.mxu3 %v185_v50 }
  0xb3   :  { %238 = vmatmul.f32.gmra.mxu1 %v176_v51 }
  0xb4   :  { %v168_v52 = vpop.f32.mrf.mxu3 }
  0xb5   :  { %v169_v53 = vadd.f32 %v660_v26, %v168_v52 }
  0xb6   :  { %v146_v54 = vpop.f32.mrf.mxu0 }
  0xb7   :  { %v147_v55 = vadd.f32 %v660_v26, %v146_v54  ;;  %v186_v56 = vmax.f32 %v169_v53, 0.0 }
  0xb9   :  { %v177_v57 = vmax.f32 %v147_v55, 0.0  ;;  %268 = vmatmul.f32.gmra.mxu3 %v186_v56 }
  0xbb   :  { %241 = vmatmul.f32.gmra.mxu1 %v177_v57 }
  0xbe   :  { %v148_v58 = vpop.f32.mrf.mxu0 }
  0xbf   :  { %v149_v59 = vadd.f32 %v660_v26, %v148_v58 }
  0xc1   :  { %v178_v60 = vmax.f32 %v149_v59, 0.0 }
  0xc3   :  { %244 = vmatmul.f32.vlgmr.msra.gmra.mxu2 %v178_v60 }
  0xc6   :  { %v151_v61 = vpop.f32.mrf.mxu0 }
  0xc7   :  { %v152_v62 = vadd.f32 %v660_v26, %v151_v61 }
  0xc9   :  { %v179_v63 = vmax.f32 %v152_v62, 0.0 }
  0xcb   :  { %247 = vmatmul.f32.gmra.mxu2 %v179_v63 }
  0xce   :  { %v153_v0 = vpop.f32.mrf.mxu0 }
  0xcf   :  { %v154_v1 = vadd.f32 %v660_v26, %v153_v0 }
  0xd1   :  { %v180_v2 = vmax.f32 %v154_v1, 0.0 }
  0xd3   :  { %250 = vmatmul.f32.gmra.mxu2 %v180_v2 }
  0xdb   :  { %253 = vmatmul.f32.gmra.mxu2 %v181_v4 }
  0xe3   :  { %256 = vmatmul.f32.gmra.mxu2 %v182_v6 }
  0xeb   :  { %259 = vmatmul.f32.gmra.mxu2 %v183_v8 }
  0xf3   :  { %262 = vmatmul.f32.gmra.mxu2 %v184_v10 }
 0x108   :  { %v224_v12 = vpop.f32.mrf.mxu1 }
 0x109   :  { %v225_v13 = vadd.f32 %v848_v11, %v224_v12 }
 0x10b   :  { %v291_v14 = vand.u32 2147483647, %v225_v13  ;;  %v275_v42 = vmax.f32 %v225_v13, 0.0 }
 0x10d   :  { %v307_v15 = vsub.f32 0.0, %v291_v14 }
 0x10f   :  { %v323_v16 = vmul.f32 1.442695, %v307_v15 }
 0x110   :  { %v227_v17 = vpop.f32.mrf.mxu1 }
 0x111   :  { %662 = vpow2.f32 %v323_v16  ;;  %v852_v18 = vadd.f32 %v848_v11, %v227_v17 }
 0x113   :  { %v292_v19 = vand.u32 2147483647, %v852_v18  ;;  %v276_v60 = vmax.f32 %v852_v18, 0.0 }
 0x115   :  { %v308_v20 = vsub.f32 0.0, %v292_v19 }
 0x117   :  { %v663_v21 = vpop.eup %662  ;;  %v325_v22 = vmul.f32 1.442695, %v308_v20 }
 0x118   :  { %v355_v23 = vadd.f32 1.0, %v663_v21  ;;  %v230_v24 = vpop.f32.mrf.mxu1  ;;  %v358_v25 = vmul.f32 -0.5, %v663_v21  ;;  %v361_v31 = vand.u32 2147483647, %v663_v21 }
 0x119   :  { %664 = vpow2.f32 %v325_v22  ;;  %v856_v26 = vadd.f32 %v848_v11, %v230_v24 }
 0x11a   :  { %666 = vlog2.f32 %v355_v23  ;;  %v359_v29 = vadd.f32 1.0, %v358_v25  ;;  %vm362_vm1 = vcmp.lt.f32.partialorder %v361_v31, 0.0004427343 }
 0x11b   :  { %v293_v27 = vand.u32 2147483647, %v856_v26  ;;  %v277_v15 = vmax.f32 %v856_v26, 0.0 }
 0x11c   :  { %v360_v40 = vmul.f32 %v663_v21, %v359_v29 }
 0x11d   :  { %v309_v30 = vsub.f32 0.0, %v293_v27 }
 0x11f   :  { %v665_v32 = vpop.eup %664  ;;  %v327_v33 = vmul.f32 1.442695, %v309_v30 }
 0x120   :  { %v667_v34 = vpop.eup %666  ;;  %v364_v36 = vadd.f32 1.0, %v665_v32  ;;  %v367_v37 = vmul.f32 -0.5, %v665_v32  ;;  %v233_v38 = vpop.f32.mrf.mxu1  ;;  %v370_v49 = vand.u32 2147483647, %v665_v32 }
 0x121   :  { %v357_v39 = vmul.f32 0.6931472, %v667_v34  ;;  %668 = vpow2.f32 %v327_v33  ;;  %v862_v41 = vadd.f32 %v848_v11, %v233_v38 }
 0x122   :  { %670 = vlog2.f32 %v364_v36  ;;  %v368_v46 = vadd.f32 1.0, %v367_v37  ;;  %vm371_vm4 = vcmp.lt.f32.partialorder %v370_v49, 0.0004427343 }
 0x123   :  { %v363_v43 = vsel %vm362_vm1, %v360_v40, %v357_v39  ;;  %v294_v44 = vand.u32 2147483647, %v862_v41  ;;  %v278_v39 = vmax.f32 %v862_v41, 0.0 }
 0x124   :  { %v499_v45 = vadd.f32 %v363_v43, %v275_v42  ;;  %v369_v54 = vmul.f32 %v665_v32, %v368_v46 }
 0x125   :  { %v310_v47 = vsub.f32 0.0, %v294_v44 }
 0x126   :  { %v515_v48 = vadd.f32 1e-06, %v499_v45 }
 0x127   :  { %v669_v50 = vpop.eup %668  ;;  %v329_v51 = vmul.f32 1.442695, %v310_v47 }
 0x128   :  { %v671_v52 = vpop.eup %670  ;;  %v531_v53 = vsel %vm274_vm2, %v515_v48, %v225_v13  ;;  %v373_v55 = vadd.f32 1.0, %v669_v50  ;;  %v236_v56 = vpop.f32.mrf.mxu1  ;;  %v376_v58 = vmul.f32 -0.5, %v669_v50  ;;  %v379_v3 = vand.u32 2147483647, %v669_v50 }
 0x129   :  { %548 = vst.msk [vmem:[%s1052_s5] sm:$0xff] %vm547_vm3, %v531_v53  ;;  %v366_v57 = vmul.f32 0.6931472, %v671_v52  ;;  %672 = vpow2.f32 %v329_v51  ;;  %v873_v59 = vadd.f32 %v848_v11, %v236_v56 }
 0x12a   :  { %674 = vlog2.f32 %v373_v55  ;;  %v377_v0 = vadd.f32 1.0, %v376_v58  ;;  %vm380_vm5 = vcmp.lt.f32.partialorder %v379_v3, 0.0004427343 }
 0x12b   :  { %v372_v61 = vsel %vm371_vm4, %v369_v54, %v366_v57  ;;  %v295_v62 = vand.u32 2147483647, %v873_v59 }
 0x12c   :  { %v500_v63 = vadd.f32 %v372_v61, %v276_v60  ;;  %v378_v13 = vmul.f32 %v669_v50, %v377_v0  ;;  %v279_v61 = vmax.f32 %v873_v59, 0.0 }
 0x12d   :  { %v311_v1 = vsub.f32 0.0, %v295_v62 }
 0x12e   :  { %v516_v2 = vadd.f32 1e-06, %v500_v63 }
 0x12f   :  { %v673_v4 = vpop.eup %672  ;;  %v331_v5 = vmul.f32 1.442695, %v311_v1 }
 0x130   :  { %v675_v6 = vpop.eup %674  ;;  %v532_v7 = vsel %vm274_vm2, %v516_v2, %v852_v18  ;;  %v382_v8 = vadd.f32 1.0, %v673_v4  ;;  %v385_v9 = vmul.f32 -0.5, %v673_v4  ;;  %v239_v10 = vpop.f32.mrf.mxu1  ;;  %v388_v24 = vand.u32 2147483647, %v673_v4 }
 0x131   :  { %549 = vst.msk [vmem:[%s1052_s5 + $0x8] sm:$0xff] %vm547_vm3, %v532_v7  ;;  %v375_v12 = vmul.f32 0.6931472, %v675_v6  ;;  %676 = vpow2.f32 %v331_v5  ;;  %v885_v14 = vadd.f32 %v848_v11, %v239_v10 }
 0x132   :  { %678 = vlog2.f32 %v382_v8  ;;  %v386_v19 = vadd.f32 1.0, %v385_v9  ;;  %vm389_vm6 = vcmp.lt.f32.partialorder %v388_v24, 0.0004427343 }
 0x133   :  { %v381_v16 = vsel %vm380_vm5, %v378_v13, %v375_v12  ;;  %v296_v17 = vand.u32 2147483647, %v885_v14 }
 0x134   :  { %v501_v18 = vadd.f32 %v381_v16, %v277_v15  ;;  %v266_v20 = vpop.f32.mrf.mxu3  ;;  %v387_v31 = vmul.f32 %v673_v4, %v386_v19  ;;  %v280_v19 = vmax.f32 %v885_v14, 0.0 }
 0x135   :  { %v312_v21 = vsub.f32 0.0, %v296_v17  ;;  %v890_v22 = vadd.f32 %v848_v11, %v266_v20 }
 0x136   :  { %v517_v23 = vadd.f32 1e-06, %v501_v18 }
 0x137   :  { %v677_v25 = vpop.eup %676  ;;  %v333_v27 = vmul.f32 1.442695, %v312_v21  ;;  %v305_v28 = vand.u32 2147483647, %v890_v22  ;;  %v289_v24 = vmax.f32 %v890_v22, 0.0 }
 0x138   :  { %v679_v29 = vpop.eup %678  ;;  %v533_v30 = vsel %vm274_vm2, %v517_v23, %v856_v26  ;;  %v391_v32 = vadd.f32 1.0, %v677_v25  ;;  %v394_v33 = vmul.f32 -0.5, %v677_v25  ;;  %v242_v34 = vpop.f32.mrf.mxu1  ;;  %v397_v49 = vand.u32 2147483647, %v677_v25 }
 0x139   :  { %550 = vst.msk [vmem:[%s1052_s5 + $0x10] sm:$0xff] %vm547_vm3, %v533_v30  ;;  %v384_v36 = vmul.f32 0.6931472, %v679_v29  ;;  %680 = vpow2.f32 %v333_v27  ;;  %v901_v37 = vadd.f32 %v848_v11, %v242_v34  ;;  %v321_v38 = vsub.f32 0.0, %v305_v28 }
 0x13a   :  { %682 = vlog2.f32 %v391_v32  ;;  %v395_v44 = vadd.f32 1.0, %v394_v33  ;;  %vm398_vm7 = vcmp.lt.f32.partialorder %v397_v49, 0.0004427343 }
 0x13b   :  { %v390_v26 = vsel %vm389_vm6, %v387_v31, %v384_v36  ;;  %v297_v40 = vand.u32 2147483647, %v901_v37  ;;  %v351_v42 = vmul.f32 1.442695, %v321_v38 }
 0x13c   :  { %v502_v43 = vadd.f32 %v390_v26, %v278_v39  ;;  %v269_v45 = vpop.f32.mrf.mxu3  ;;  %v396_v55 = vmul.f32 %v677_v25, %v395_v44 }
 0x13d   :  { %v313_v46 = vsub.f32 0.0, %v297_v40  ;;  %684 = vpow2.f32 %v351_v42  ;;  %v906_v47 = vadd.f32 %v848_v11, %v269_v45 }
 0x13e   :  { %v518_v48 = vadd.f32 1e-06, %v502_v43 }
 0x13f   :  { %v681_v50 = vpop.eup %680  ;;  %v335_v51 = vmul.f32 1.442695, %v313_v46  ;;  %v306_v52 = vand.u32 2147483647, %v906_v47 }
 0x140   :  { %v683_v53 = vpop.eup %682  ;;  %v534_v54 = vsel %vm274_vm2, %v518_v48, %v862_v41  ;;  %v400_v56 = vadd.f32 1.0, %v681_v50  ;;  %v403_v58 = vmul.f32 -0.5, %v681_v50  ;;  %v406_v4 = vand.u32 2147483647, %v681_v50 }
 0x141   :  { %551 = vst.msk [vmem:[%s1052_s5 + $0x18] sm:$0xff] %vm547_vm3, %v534_v54  ;;  %v393_v57 = vmul.f32 0.6931472, %v683_v53  ;;  %686 = vpow2.f32 %v335_v51  ;;  %v322_v60 = vsub.f32 0.0, %v306_v52  ;;  %v281_v51 = vmax.f32 %v901_v37, 0.0 }
 0x142   :  { %688 = vlog2.f32 %v400_v56  ;;  %v404_v2 = vadd.f32 1.0, %v403_v58  ;;  %vm407_vm8 = vcmp.lt.f32.partialorder %v406_v4, 0.0004427343 }
 0x143   :  { %v685_v62 = vpop.eup %684  ;;  %v399_v63 = vsel %vm398_vm7, %v396_v55, %v393_v57  ;;  %v353_v0 = vmul.f32 1.442695, %v322_v60 }
 0x144   :  { %v503_v1 = vadd.f32 %v399_v63, %v279_v61  ;;  %v481_v41 = vadd.f32 1.0, %v685_v62  ;;  %v484_v6 = vmul.f32 -0.5, %v685_v62  ;;  %v487_v13 = vand.u32 2147483647, %v685_v62 }
 0x145   :  { %690 = vpow2.f32 %v353_v0  ;;  %v405_v16 = vmul.f32 %v681_v50, %v404_v2 }
 0x146   :  { %v519_v3 = vadd.f32 1e-06, %v503_v1  ;;  %v245_v5 = vpop.f32.mrf.mxu2  ;;  %692 = vlog2.f32 %v481_v41  ;;  %v485_v20 = vadd.f32 1.0, %v484_v6  ;;  %vm930_vm9 = vcmp.lt.f32.partialorder %v487_v13, 0.0004427343 }
 0x147   :  { %v687_v7 = vpop.eup %686  ;;  %v918_v8 = vadd.f32 %v848_v11, %v245_v5 }
 0x148   :  { %v689_v9 = vpop.eup %688  ;;  %v535_v10 = vsel %vm274_vm2, %v519_v3, %v873_v59  ;;  %v409_v12 = vadd.f32 1.0, %v687_v7  ;;  %v412_v17 = vmul.f32 -0.5, %v687_v7  ;;  %v486_v28 = vmul.f32 %v685_v62, %v485_v20 }
 0x149   :  { %552 = vst.msk [vmem:[%s1052_s5 + $0x20] sm:$0xff] %vm547_vm3, %v535_v10  ;;  %v402_v15 = vmul.f32 0.6931472, %v689_v9  ;;  %v298_v18 = vand.u32 2147483647, %v918_v8  ;;  %v290_v62 = vmax.f32 %v906_v47, 0.0 }
 0x14a   :  { %694 = vlog2.f32 %v409_v12  ;;  %v413_v31 = vadd.f32 1.0, %v412_v17  ;;  %v415_v38 = vand.u32 2147483647, %v687_v7 }
 0x14b   :  { %v691_v21 = vpop.eup %690  ;;  %v408_v23 = vsel %vm407_vm8, %v405_v16, %v402_v15  ;;  %v314_v59 = vsub.f32 0.0, %v298_v18 }
 0x14c   :  { %v693_v25 = vpop.eup %692  ;;  %v504_v27 = vadd.f32 %v408_v23, %v280_v19  ;;  %v490_v30 = vadd.f32 1.0, %v691_v21  ;;  %v493_v34 = vmul.f32 -0.5, %v691_v21  ;;  %v496_v46 = vand.u32 2147483647, %v691_v21 }
 0x14d   :  { %v337_v32 = vmul.f32 1.442695, %v314_v59  ;;  %v483_v33 = vmul.f32 0.6931472, %v693_v25  ;;  %v414_v49 = vmul.f32 %v687_v7, %v413_v31  ;;  %vm416_vm10 = vcmp.lt.f32.partialorder %v415_v38, 0.0004427343 }
 0x14e   :  { %v520_v36 = vadd.f32 1e-06, %v504_v27  ;;  %v248_v39 = vpop.f32.mrf.mxu2  ;;  %696 = vlog2.f32 %v490_v30  ;;  %v494_v42 = vadd.f32 1.0, %v493_v34  ;;  %vm951_vm11 = vcmp.lt.f32.partialorder %v496_v46, 0.0004427343 }
 0x14f   :  { %698 = vpow2.f32 %v337_v32  ;;  %v489_v26 = vsel %vm930_vm9, %v486_v28, %v483_v33  ;;  %v937_v40 = vadd.f32 %v848_v11, %v248_v39  ;;  %v282_v59 = vmax.f32 %v918_v8, 0.0 }
 0x150   :  { %v695_v43 = vpop.eup %694  ;;  %v536_v44 = vsel %vm274_vm2, %v520_v36, %v885_v14  ;;  %v513_v45 = vadd.f32 %v489_v26, %v289_v24  ;;  %v495_v55 = vmul.f32 %v691_v21, %v494_v42 }
 0x151   :  { %553 = vst.msk [vmem:[%s1052_s5 + $0x28] sm:$0xff] %vm547_vm3, %v536_v44  ;;  %v411_v48 = vmul.f32 0.6931472, %v695_v43  ;;  %v299_v50 = vand.u32 2147483647, %v937_v40  ;;  %v283_v44 = vmax.f32 %v937_v40, 0.0 }
 0x152   :  { %v529_v52 = vadd.f32 1e-06, %v513_v45 }
 0x153   :  { %v417_v53 = vsel %vm416_vm10, %v414_v49, %v411_v48  ;;  %v315_v54 = vsub.f32 0.0, %v299_v50 }
 0x154   :  { %v697_v56 = vpop.eup %696  ;;  %v505_v14 = vadd.f32 %v417_v53, %v281_v51  ;;  %v545_v57 = vsel %vm274_vm2, %v529_v52, %v890_v22 }
 0x155   :  { %v699_v60 = vpop.eup %698  ;;  %562 = vst.msk [vmem:[%s1052_s5 + $0x70] sm:$0xff] %vm547_vm3, %v545_v57  ;;  %v339_v61 = vmul.f32 1.442695, %v315_v54  ;;  %v492_v63 = vmul.f32 0.6931472, %v697_v56 }
 0x156   :  { %v521_v0 = vadd.f32 1e-06, %v505_v14  ;;  %v418_v1 = vadd.f32 1.0, %v699_v60  ;;  %v251_v41 = vpop.f32.mrf.mxu2  ;;  %v421_v2 = vmul.f32 -0.5, %v699_v60  ;;  %v424_v12 = vand.u32 2147483647, %v699_v60 }
 0x157   :  { %700 = vpow2.f32 %v339_v61  ;;  %v498_v22 = vsel %vm951_vm11, %v495_v55, %v492_v63  ;;  %v963_v3 = vadd.f32 %v848_v11, %v251_v41 }
 0x158   :  { %v537_v4 = vsel %vm274_vm2, %v521_v0, %v901_v37  ;;  %702 = vlog2.f32 %v418_v1  ;;  %v514_v5 = vadd.f32 %v498_v22, %v290_v62  ;;  %v422_v7 = vadd.f32 1.0, %v421_v2 }
 0x159   :  { %554 = vst.msk [vmem:[%s1052_s5 + $0x30] sm:$0xff] %vm547_vm3, %v537_v4  ;;  %v300_v6 = vand.u32 2147483647, %v963_v3  ;;  %vm425_vm12 = vcmp.lt.f32.partialorder %v424_v12, 0.0004427343  ;;  %v284_v62 = vmax.f32 %v963_v3, 0.0 }
 0x15a   :  { %v530_v9 = vadd.f32 1e-06, %v514_v5  ;;  %v423_v21 = vmul.f32 %v699_v60, %v422_v7 }
 0x15b   :  { %v316_v10 = vsub.f32 0.0, %v300_v6 }
 0x15c   :  { %v546_v15 = vsel %vm274_vm2, %v530_v9, %v906_v47 }
 0x15d   :  { %v701_v13 = vpop.eup %700  ;;  %v341_v16 = vmul.f32 1.442695, %v316_v10  ;;  %563 = vst.msk [vmem:[%s1052_s5 + $0x78] sm:$0xff] %vm547_vm3, %v546_v15 }
 0x15e   :  { %v703_v37 = vpop.eup %702  ;;  %v427_v17 = vadd.f32 1.0, %v701_v13  ;;  %v430_v18 = vmul.f32 -0.5, %v701_v13  ;;  %v254_v19 = vpop.f32.mrf.mxu2  ;;  %v433_v30 = vand.u32 2147483647, %v701_v13 }
 0x15f   :  { %v420_v20 = vmul.f32 0.6931472, %v703_v37  ;;  %704 = vpow2.f32 %v341_v16  ;;  %v981_v23 = vadd.f32 %v848_v11, %v254_v19 }
 0x160   :  { %706 = vlog2.f32 %v427_v17  ;;  %v431_v27 = vadd.f32 1.0, %v430_v18  ;;  %vm434_vm13 = vcmp.lt.f32.partialorder %v433_v30, 0.0004427343 }
 0x161   :  { %v426_v47 = vsel %vm425_vm12, %v423_v21, %v420_v20  ;;  %v301_v24 = vand.u32 2147483647, %v981_v23  ;;  %v285_v37 = vmax.f32 %v981_v23, 0.0 }
 0x162   :  { %v506_v25 = vadd.f32 %v426_v47, %v282_v59  ;;  %v432_v36 = vmul.f32 %v701_v13, %v431_v27 }
 0x163   :  { %v317_v28 = vsub.f32 0.0, %v301_v24 }
 0x164   :  { %v522_v29 = vadd.f32 1e-06, %v506_v25 }
 0x165   :  { %v705_v31 = vpop.eup %704  ;;  %v343_v32 = vmul.f32 1.442695, %v317_v28 }
 0x166   :  { %v707_v33 = vpop.eup %706  ;;  %v538_v34 = vsel %vm274_vm2, %v522_v29, %v918_v8  ;;  %v436_v38 = vadd.f32 1.0, %v705_v31  ;;  %v257_v39 = vpop.f32.mrf.mxu2  ;;  %v439_v42 = vmul.f32 -0.5, %v705_v31  ;;  %v442_v51 = vand.u32 2147483647, %v705_v31 }
 0x167   :  { %555 = vst.msk [vmem:[%s1052_s5 + $0x38] sm:$0xff] %vm547_vm3, %v538_v34  ;;  %v429_v26 = vmul.f32 0.6931472, %v707_v33  ;;  %708 = vpow2.f32 %v343_v32  ;;  %v993_v43 = vadd.f32 %v848_v11, %v257_v39 }
 0x168   :  { %710 = vlog2.f32 %v436_v38  ;;  %v440_v48 = vadd.f32 1.0, %v439_v42  ;;  %vm443_vm14 = vcmp.lt.f32.partialorder %v442_v51, 0.0004427343 }
 0x169   :  { %v435_v45 = vsel %vm434_vm13, %v432_v36, %v429_v26  ;;  %v302_v8 = vand.u32 2147483647, %v993_v43 }
 0x16a   :  { %v507_v46 = vadd.f32 %v435_v45, %v283_v44  ;;  %v441_v60 = vmul.f32 %v705_v31, %v440_v48  ;;  %v286_v31 = vmax.f32 %v993_v43, 0.0 }
 0x16b   :  { %v318_v49 = vsub.f32 0.0, %v302_v8 }
 0x16c   :  { %v523_v50 = vadd.f32 1e-06, %v507_v46 }
 0x16d   :  { %v709_v52 = vpop.eup %708  ;;  %v345_v53 = vmul.f32 1.442695, %v318_v49 }
 0x16e   :  { %v711_v54 = vpop.eup %710  ;;  %v539_v55 = vsel %vm274_vm2, %v523_v50, %v937_v40  ;;  %v445_v56 = vadd.f32 1.0, %v709_v52  ;;  %v448_v14 = vmul.f32 -0.5, %v709_v52  ;;  %v260_v57 = vpop.f32.mrf.mxu2  ;;  %v451_v22 = vand.u32 2147483647, %v709_v52 }
 0x16f   :  { %556 = vst.msk [vmem:[%s1052_s5 + $0x40] sm:$0xff] %vm547_vm3, %v539_v55  ;;  %v438_v58 = vmul.f32 0.6931472, %v711_v54  ;;  %712 = vpow2.f32 %v345_v53  ;;  %v1005_v61 = vadd.f32 %v848_v11, %v260_v57 }
 0x170   :  { %714 = vlog2.f32 %v445_v56  ;;  %v449_v1 = vadd.f32 1.0, %v448_v14  ;;  %vm452_vm15 = vcmp.lt.f32.partialorder %v451_v22, 0.0004427343 }
 0x171   :  { %v444_v63 = vsel %vm443_vm14, %v441_v60, %v438_v58  ;;  %v303_v40 = vand.u32 2147483647, %v1005_v61  ;;  %v287_v46 = vmax.f32 %v1005_v61, 0.0 }
 0x172   :  { %v508_v0 = vadd.f32 %v444_v63, %v284_v62  ;;  %v450_v9 = vmul.f32 %v709_v52, %v449_v1 }
 0x173   :  { %v319_v41 = vsub.f32 0.0, %v303_v40 }
 0x174   :  { %v524_v2 = vadd.f32 1e-06, %v508_v0 }
 0x175   :  { %v713_v4 = vpop.eup %712  ;;  %v347_v5 = vmul.f32 1.442695, %v319_v41 }
 0x176   :  { %v715_v6 = vpop.eup %714  ;;  %v540_v7 = vsel %vm274_vm2, %v524_v2, %v963_v3  ;;  %v454_v10 = vadd.f32 1.0, %v713_v4  ;;  %v263_v12 = vpop.f32.mrf.mxu2  ;;  %v457_v15 = vmul.f32 -0.5, %v713_v4  ;;  %v460_v59 = vand.u32 2147483647, %v713_v4 }
 0x177   :  { %557 = vst.msk [vmem:[%s1052_s5 + $0x48] sm:$0xff] %vm547_vm3, %v540_v7  ;;  %v447_v13 = vmul.f32 0.6931472, %v715_v6  ;;  %716 = vpow2.f32 %v347_v5  ;;  %v264_v16 = vadd.f32 %v848_v11, %v263_v12 }
 0x178   :  { %718 = vlog2.f32 %v454_v10  ;;  %v458_v19 = vadd.f32 1.0, %v457_v15  ;;  %vm461_vm0 = vcmp.lt.f32.partialorder %v460_v59, 0.0004427343 }
 0x179   :  { %v453_v17 = vsel %vm452_vm15, %v450_v9, %v447_v13  ;;  %v304_v18 = vand.u32 2147483647, %v264_v16  ;;  %v288_v56 = vmax.f32 %v264_v16, 0.0 }
 0x17a   :  { %v509_v3 = vadd.f32 %v453_v17, %v285_v37  ;;  %v459_v29 = vmul.f32 %v713_v4, %v458_v19 }
 0x17b   :  { %v320_v20 = vsub.f32 0.0, %v304_v18 }
 0x17c   :  { %v525_v21 = vadd.f32 1e-06, %v509_v3 }
 0x17d   :  { %v717_v47 = vpop.eup %716  ;;  %v349_v24 = vmul.f32 1.442695, %v320_v20 }
 0x17e   :  { %v719_v25 = vpop.eup %718  ;;  %v541_v27 = vsel %vm274_vm2, %v525_v21, %v981_v23  ;;  %v463_v28 = vadd.f32 1.0, %v717_v47  ;;  %v466_v30 = vmul.f32 -0.5, %v717_v47  ;;  %v469_v38 = vand.u32 2147483647, %v717_v47 }
 0x17f   :  { %558 = vst.msk [vmem:[%s1052_s5 + $0x50] sm:$0xff] %vm547_vm3, %v541_v27  ;;  %v456_v11 = vmul.f32 0.6931472, %v719_v25  ;;  %720 = vpow2.f32 %v349_v24 }
 0x180   :  { %722 = vlog2.f32 %v463_v28  ;;  %v467_v34 = vadd.f32 1.0, %v466_v30  ;;  %vm470_vm1 = vcmp.lt.f32.partialorder %v469_v38, 0.0004427343 }
 0x181   :  { %v462_v32 = vsel %vm461_vm0, %v459_v29, %v456_v11 }
 0x182   :  { %v510_v33 = vadd.f32 %v462_v32, %v286_v31  ;;  %v468_v45 = vmul.f32 %v717_v47, %v467_v34 }
 0x184   :  { %v526_v36 = vadd.f32 1e-06, %v510_v33 }
 0x185   :  { %v721_v23 = vpop.eup %720 }
 0x186   :  { %v723_v39 = vpop.eup %722  ;;  %v542_v26 = vsel %vm274_vm2, %v526_v36, %v993_v43  ;;  %v472_v42 = vadd.f32 1.0, %v721_v23  ;;  %v475_v8 = vmul.f32 -0.5, %v721_v23  ;;  %v478_v52 = vand.u32 2147483647, %v721_v23 }
 0x187   :  { %559 = vst.msk [vmem:[%s1052_s5 + $0x58] sm:$0xff] %vm547_vm3, %v542_v26  ;;  %v465_v44 = vmul.f32 0.6931472, %v723_v39 }
 0x188   :  { %724 = vlog2.f32 %v472_v42  ;;  %v476_v50 = vadd.f32 1.0, %v475_v8  ;;  %vm479_vm4 = vcmp.lt.f32.partialorder %v478_v52, 0.0004427343 }
 0x189   :  { %v471_v48 = vsel %vm470_vm1, %v468_v45, %v465_v44 }
 0x18a   :  { %v511_v49 = vadd.f32 %v471_v48, %v287_v46  ;;  %v477_v55 = vmul.f32 %v721_v23, %v476_v50 }
 0x18c   :  { %v527_v51 = vadd.f32 1e-06, %v511_v49 }
 0x18e   :  { %v725_v53 = vpop.eup %724  ;;  %v543_v43 = vsel %vm274_vm2, %v527_v51, %v1005_v61 }
 0x18f   :  { %560 = vst.msk [vmem:[%s1052_s5 + $0x60] sm:$0xff] %vm547_vm3, %v543_v43  ;;  %v474_v54 = vmul.f32 0.6931472, %v725_v53 }
 0x191   :  { %v480_v14 = vsel %vm479_vm4, %v477_v55, %v474_v54 }
 0x192   :  { %v512_v57 = vadd.f32 %v480_v14, %v288_v56 }
 0x194   :  { %v528_v58 = vadd.f32 1e-06, %v512_v57 }
 0x196   :  { %v544_v60 = vsel %vm274_vm2, %v528_v58, %v264_v16 }
 0x197   :  { %561 = vst.msk [vmem:[%s1052_s5 + $0x68] sm:$0xff] %vm547_vm3, %v544_v60 }

</bundles_post_ra>
